<compile_context>
chip_gen: v5e
topology: v5e:2x2
jax: 0.10.0
libtpu: 0.0.40
codegen_flags: <defaults>
</compile_context>

<pallas_src>
import math

import jax
import jax.numpy as jnp
from jax.experimental import pallas as pl
from jax.experimental.pallas import tpu as pltpu


def _pos_enc_kernel(x_ref, pe_ref, o_ref):
    # x_ref : (TS, TN) tile of flattened x rows (N = batch * d_model)
    # pe_ref: (1,  TN) flattened pe row (resident across the inner seq loop)
    # o_ref : (TS, TN)
    o_ref[...] = (x_ref[...] + pe_ref[...]).astype(o_ref.dtype)


def make_pe_table(d_model: int, max_len: int = 5000) -> jnp.ndarray:
    """Deterministic sin/cos table identical to the PyTorch __init__."""
    position = jnp.arange(max_len, dtype=jnp.float32)[:, None]              # [L, 1]
    div_term = jnp.exp(
        jnp.arange(0, d_model, 2, dtype=jnp.float32) * (-math.log(10000.0) / d_model)
    )                                                                        # [D/2]
    pe = jnp.zeros((max_len, 1, d_model), dtype=jnp.float32)
    pe = pe.at[:, 0, 0::2].set(jnp.sin(position * div_term))
    pe = pe.at[:, 0, 1::2].set(jnp.cos(position * div_term))
    return pe                                                                # [L, 1, D]


def _choose_tiles(S: int, N: int, dtype_bytes: int,
                  vmem_budget_bytes: int = 32 << 20) -> tuple[int, int]:
    """Pick (seq_tile, lane_tile).

    Budget assumes 4 large live buffers (double-buffered input + output tiles);
    the pe tile is one row and negligible.  Lane tiling only kicks in when a
    single flattened row would blow the per-buffer budget; lane tiles are kept
    multiples of 128 to satisfy the (8, 128) block constraint.
    """
    per_buf = max(vmem_budget_bytes // 4, 1)

    if N * dtype_bytes <= per_buf or N <= 128:
        tn = N                                        # full lane extent (preferred)
    else:
        max_cols = per_buf // (8 * dtype_bytes)       # keep >= 8 rows per tile
        tn = max(128, (min(N, max_cols) // 128) * 128)

    row_bytes = tn * dtype_bytes
    max_rows = max(8, per_buf // max(row_bytes, 1))
    ts = min(S, 512, max_rows)
    if ts < S:
        ts = max(8, (ts // 8) * 8)                    # (8, 128) constraint on partial blocks
    return ts, tn


def positional_encoding_forward(x: jnp.ndarray, pe: jnp.ndarray) -> jnp.ndarray:
    """x: [seq_len, batch, d_model]; pe: [max_len, 1, d_model] -> same shape/dtype as x."""
    S, B, D = x.shape
    max_len = pe.shape[0]
    assert B <= max_len, (
        "batch must be <= max_len: the original module indexes pe by the batch position"
    )

    N = B * D
    dtype_bytes = jnp.dtype(x.dtype).itemsize

    # Free reshapes (row-major contiguous): no extra HBM pass, no transpose.
    x2 = x.reshape(S, N)                                   # [S, B*D]  lane-dense view
    pe_flat = pe[:B, 0, :].astype(x.dtype).reshape(1, N)   # [1, B*D]  pre-cast to x.dtype

    ts, tn = _choose_tiles(S, N, dtype_bytes)
    gs = pl.cdiv(S, ts)
    gn = pl.cdiv(N, tn)

    # Lane axis outer, seq axis inner: the pe tile's block index is constant in
    # the inner axis, so it stays resident in VMEM across the whole seq sweep.
    out2 = pl.pallas_call(
        _pos_enc_kernel,
        out_shape=jax.ShapeDtypeStruct((S, N), x.dtype),
        grid_spec=pltpu.PrefetchScalarGridSpec(
            num_scalar_prefetch=0,
            grid=(gn, gs),
            in_specs=[
                pl.BlockSpec((ts, tn), lambda j, i: (i, j)),
                pl.BlockSpec((1, tn), lambda j, i: (0, j)),
            ],
            out_specs=pl.BlockSpec((ts, tn), lambda j, i: (i, j)),
        ),
        compiler_params=pltpu.CompilerParams(
            dimension_semantics=("parallel", "parallel"),   # v7x: shard across 2 TCs
            vmem_limit_bytes=48 << 20,                      # headroom over scoped defaults
        ),
        cost_estimate=pl.CostEstimate(
            flops=S * N,
            transcendentals=0,
            bytes_accessed=2 * S * N * dtype_bytes + N * dtype_bytes,
        ),
    )(x2, pe_flat)

    return out2.reshape(S, B, D)


if __name__ == "__main__":
    # Small shapes consistent with the module's forward contract.
    seq_len, batch, d_model = 8, 2, 32
    max_len = 16
    dropout_p = 0.1  # eval mode -> identity

    key = jax.random.PRNGKey(0)
    x = jax.random.normal(key, (seq_len, batch, d_model), dtype=jnp.float32)

    pe = make_pe_table(d_model, max_len)

    out = positional_encoding_forward(x, pe)
    out = jax.block_until_ready(out)

    # Pure-JAX reference reproducing the PyTorch forward exactly.
    x_perm = jnp.transpose(x, (1, 0, 2))                # [B, S, D]
    ref = x_perm + pe[: x_perm.shape[0]]                # pe broadcast over seq axis
    ref = jnp.transpose(ref, (1, 0, 2))                 # back to [S, B, D]

    assert out.shape == x.shape
    assert out.dtype == x.dtype
    assert jnp.allclose(out, ref, atol=1e-6, rtol=1e-6), "mismatch vs reference"

    print("KERNEL_OK")
</pallas_src>

<mosaic_0001>
module attributes {stable_mosaic.version = 11 : i64} {
  func.func @_pos_enc_kernel(%arg0: i32, %arg1: i32, %arg2: memref<8x64xf32, #tpu.memory_space<vmem>>, %arg3: memref<1x64xf32, #tpu.memory_space<vmem>>, %arg4: memref<8x64xf32, #tpu.memory_space<vmem>>) attributes {dimension_semantics = [#tpu.dimension_semantics<parallel>, #tpu.dimension_semantics<parallel>], iteration_bounds = array<i64: 1, 1>, scalar_prefetch = 0 : i64, scratch_operands = 0 : i64, tpu.core_type = #tpu.core_type<tc>, window_params = [{transform_indices = @transform_0, window_bounds = array<i64: 8, 64>}, {transform_indices = @transform_1, window_bounds = array<i64: 1, 64>}, {transform_indices = @transform_2, window_bounds = array<i64: 8, 64>}]} {
    %c0 = arith.constant 0 : index
    %c0_0 = arith.constant 0 : index
    %0 = vector.load %arg2[%c0, %c0_0] : memref<8x64xf32, #tpu.memory_space<vmem>>, vector<8x64xf32>
    %c0_1 = arith.constant 0 : index
    %c0_2 = arith.constant 0 : index
    %1 = vector.load %arg3[%c0_1, %c0_2] : memref<1x64xf32, #tpu.memory_space<vmem>>, vector<1x64xf32>
    %2 = vector.broadcast %1 : vector<1x64xf32> to vector<8x64xf32>
    %3 = arith.addf %0, %2 : vector<8x64xf32>
    %c0_3 = arith.constant 0 : index
    %c0_4 = arith.constant 0 : index
    %4 = vector.load %arg4[%c0_3, %c0_4] : memref<8x64xf32, #tpu.memory_space<vmem>>, vector<8x64xf32>
    tpu.vector_store %arg4[%c0_3, %c0_4], %3 {strides = array<i32>} : memref<8x64xf32, #tpu.memory_space<vmem>>, vector<8x64xf32>,
    return
  }
  func.func @transform_0(%arg0: i32, %arg1: i32) -> (i32, i32) {
    %c0_i32 = arith.constant 0 : i32
    return %arg1, %arg0 : i32, i32
  }
  func.func @transform_1(%arg0: i32, %arg1: i32) -> (i32, i32) {
    %c0_i32 = arith.constant 0 : i32
    %c0_i32_0 = arith.constant 0 : i32
    return %c0_i32, %arg0 : i32, i32
  }
  func.func @transform_2(%arg0: i32, %arg1: i32) -> (i32, i32) {
    %c0_i32 = arith.constant 0 : i32
    return %arg1, %arg0 : i32, i32
  }
}

</mosaic_0001>

<bundles_post_ra>
// kernel: tpu_custom_call.1
= control target key start
LH: loop header
LB: loop body
LE: loop exit
PB: predicated region body
PF: predicated region fallthrough
CT: control target
= control target key end

     0   :  { %7 = vsyncpa [#allocation3], 0  ;;  %s175_s0 = inlined_call_operand.hbm [shape: f32[8,64], index: 0, kind: input, shape index: {}]   ;;  %s176_s1 = inlined_call_operand.hbm [shape: f32[1,64], index: 1, kind: input, shape index: {}]   ;;  %s177_s2 = inlined_call_operand.hbm [shape: f32[8,64], index: 2, kind: output, shape index: {}]  }
   0x1   :  { %8 = vsyncpa [#allocation6], 0 }
   0x2   :  { %9 = vsyncpa [#allocation4], 0  ;;  %s15_s11 = sshll.u32 %s175_s0, 4  ;;  %s148_s12 = smov [#allocation2]   ;;  %s16_s11 = int_to_ptr.hbm [resolvable:$true] %s15_s11 }
   0x3   :  { %s17_s13 = sshll.u32 %s148_s12, 4  ;;  %s26_s16 = sshll.u32 %s176_s1, 4  ;;  %s18_s13 = int_to_ptr.vmem [resolvable:$true] %s17_s13  ;;  %s27_s16 = int_to_ptr.hbm [resolvable:$true] %s26_s16 }
   0x4   :  { %20 = dma.hbm_to_vmem [thread:$0]  %s16_s11, 128, %s18_s13, [#allocation3]  }
   0x5   :  { %s149_s17 = smov [#allocation5]  }
   0x6   :  { %s28_s18 = sshll.u32 %s149_s17, 4  ;;  %s29_s18 = int_to_ptr.vmem [resolvable:$true] %s28_s18 }
   0x7   :  { %31 = dma.hbm_to_vmem [thread:$0]  %s27_s16, 16, %s29_s18, [#allocation6]  }
   0x8   :  { %142 = dma.done.wait [#allocation3], 128  }
   0x9   :  { %143 = vsyncadd [#allocation3], 4294967168 }
   0xa   :  { %144 = dma.done.wait [#allocation6], 16  }
   0xb   :  { %145 = vsyncadd [#allocation6], 4294967280  ;;  %s150_s19 = smov [#allocation7]   ;;  %s55_s22 = sshll.u32 %s177_s2, 4  ;;  %v40_v0 = vld [vmem:[#allocation2] sm:$0xff]  ;;  %vm46_vm0 = vcmask 523264   ;;  %s56_s22 = int_to_ptr.hbm [resolvable:$true] %s55_s22 }
   0xc   :  { %s53_s0 = sshll.u32 %s150_s19, 4  ;;  %v69_v1 = vld [vmem:[#allocation5] ss:$0 sm:$0xff]  ;;  %s54_s0 = int_to_ptr.vmem [resolvable:$true] %s53_s0 }
   0xd   :  { %v45_v2 = vadd.f32 %v69_v1, %v40_v0 }
   0xf   :  { %47 = vst.msk [vmem:[#allocation7] sm:$0xff] %vm46_vm0, %v45_v2 }
  0x10   :  { %58 = dma.vmem_to_hbm [thread:$0]  %s54_s0, 128, %s56_s22, [#allocation4]  }
  0x11   :  { %146 = dma.done.wait [#allocation4], 128  }
  0x12   :  { %147 = vsyncadd [#allocation4], 4294967168 }
  0x13   :  { %63 = vsyncpa [#allocation3], 1 }
  0x14   :  { %64 = vsyncpa [#allocation6], 1 }
  0x15   :  { %65 = vsyncpa [#allocation4], 1 }

</bundles_post_ra>
